<compile_context>
chip_gen: v6e
topology: v6e:2x2x1
jax: 0.10.0
libtpu: 0.0.40
codegen_flags: <defaults>
</compile_context>

<pallas_src>
import jax
import jax.numpy as jnp
from jax.experimental import pallas as pl
from jax.experimental.pallas import tpu as pltpu


def _round_up(x, m):
    return ((x + m - 1) // m) * m


# --------------------------- stage 1: hidden + BN + ReLU ---------------------------
def _hidden_bn_relu_kernel(z_ref, w1_ref, gamma_ref, beta_ref, h_ref):
    # Linear.  The bias b1 is omitted: BatchNorm's mean subtraction cancels it.
    h = jnp.dot(z_ref[...], w1_ref[...], preferred_element_type=jnp.float32)

    # BatchNorm1d, training mode (biased batch stats, eps=1e-3).
    # Two-pass (mean, then centred variance) in f32 for numerical parity with
    # the PyTorch reference.
    inv_n = 1.0 / h.shape[0]
    mean = jnp.sum(h, axis=0, keepdims=True) * inv_n
    centred = h - mean
    var = jnp.sum(centred * centred, axis=0, keepdims=True) * inv_n
    scale = gamma_ref[...] * jax.lax.rsqrt(var + 0.001)

    # affine + ReLU, then cast to the MXU dtype used by the head matmuls.
    h_ref[...] = jnp.maximum(centred * scale + beta_ref[...], 0.0).astype(h_ref.dtype)


# --------------------------- stage 2: fused mean|var heads ---------------------------
def _head_kernel(h_ref, w_ref, b_ref, out_ref):
    head = pl.program_id(1)  # 0 = mean decoder, 1 = var decoder
    logits = jnp.dot(h_ref[...], w_ref[...],
                     preferred_element_type=jnp.float32) + b_ref[...]

    @pl.when(head == 0)          # mean head: identity
    def _():
        out_ref[...] = logits.astype(out_ref.dtype)

    @pl.when(head == 1)          # var head: exp(.) + 1e-4 (EUP, f32)
    def _():
        out_ref[...] = (jnp.exp(logits) + 0.0001).astype(out_ref.dtype)


# --------------------------- weight-load-time packing ---------------------------
def pack_gaussian_decoder_params(w1, gamma, beta, wm, bm, wv, bv,
                                 *, tile_n=2048, mxu_dtype=jnp.bfloat16):
    """Pack / pad / cast the decoder weights ONCE (call at weight-load time).

    w1: (n_input, n_hidden) pre-transposed first layer.  gamma/beta: (1, n_hidden)
    BatchNorm affine.  wm/wv: (n_hidden, n_output) pre-transposed heads.
    bm/bv: (1, n_output) head biases.  The first-layer bias b1 is intentionally
    not taken: BatchNorm cancels it exactly in the forward pass.
    """
    n_hidden, n_output = wm.shape
    # Feature tile: multiple of 128 lanes, capped at tile_n; features are then
    # padded UP to a multiple of the tile (no divisor-shrink loop).
    tn = min(tile_n, _round_up(n_output, 128))
    n_pad = _round_up(n_output, tn)
    pad = n_pad - n_output

    def pad_cols(a):
        return jnp.pad(a, ((0, 0), (0, pad))) if pad else a

    # Head-major packing: index 0 = mean decoder, index 1 = var decoder.
    wmv = jnp.stack([pad_cols(wm), pad_cols(wv)]).astype(mxu_dtype)       # (2, n_hidden, n_pad)
    bmv = jnp.stack([pad_cols(bm), pad_cols(bv)]).astype(jnp.float32)     # (2, 1, n_pad)

    return dict(
        w1=jnp.asarray(w1, jnp.float32),
        gamma=jnp.asarray(gamma, jnp.float32).reshape(1, n_hidden),
        beta=jnp.asarray(beta, jnp.float32).reshape(1, n_hidden),
        wmv=wmv, bmv=bmv,
        n_hidden=n_hidden, n_output=n_output, n_pad=n_pad, tile_n=tn,
        mxu_dtype=mxu_dtype,
    )


# --------------------------- forward ---------------------------
def gaussian_decoder(z, params, *, out_dtype=jnp.float32, wmv_buffers=2,
                     trim_output=True):
    """GaussianDecoder forward.  z: (B, n_input); params from
    pack_gaussian_decoder_params.  Set out_dtype=jnp.bfloat16 to halve the
    output writeback if downstream tolerates it; set wmv_buffers=3 on v5e to
    triple-buffer the streamed head-weight tiles."""
    w1, gamma, beta = params["w1"], params["gamma"], params["beta"]
    wmv, bmv = params["wmv"], params["bmv"]
    n_hidden = params["n_hidden"]
    n_output = params["n_output"]
    n_pad = params["n_pad"]
    tn = params["tile_n"]
    mxu_dtype = params["mxu_dtype"]

    B, n_input = z.shape

    # ---- stage 1: hidden layer + BatchNorm + ReLU (single tiny grid step, f32) ----
    h = pl.pallas_call(
        _hidden_bn_relu_kernel,
        out_shape=jax.ShapeDtypeStruct((B, n_hidden), mxu_dtype),
        grid_spec=pltpu.PrefetchScalarGridSpec(
            num_scalar_prefetch=0,
            grid=(1,),
            in_specs=[
                pl.BlockSpec((B, n_input), lambda i: (0, 0)),
                pl.BlockSpec((n_input, n_hidden), lambda i: (0, 0)),
                pl.BlockSpec((1, n_hidden), lambda i: (0, 0)),
                pl.BlockSpec((1, n_hidden), lambda i: (0, 0)),
            ],
            out_specs=pl.BlockSpec((B, n_hidden), lambda i: (0, 0)),
        ),
        compiler_params=pltpu.CompilerParams(dimension_semantics=("arbitrary",)),
    )(z.astype(jnp.float32), w1, gamma, beta)

    # ---- stage 2: fused mean|var heads with streamed weight tiles ----
    n_tiles = n_pad // tn
    itemsize_out = jnp.dtype(out_dtype).itemsize
    # Double-buffered footprint (h resident, weights/bias/output streamed).
    footprint = (2 * B * n_hidden * 2
                 + max(wmv_buffers, 2) * n_hidden * tn * 2
                 + 2 * tn * 4
                 + 2 * B * tn * itemsize_out)
    vmem_limit = min(64 << 20, max(32 << 20, footprint + (4 << 20)))

    wmv_spec_kwargs = {}
    if wmv_buffers != 2:
        wmv_spec_kwargs["pipeline_mode"] = pl.Buffered(wmv_buffers)

    out = pl.pallas_call(
        _head_kernel,
        out_shape=jax.ShapeDtypeStruct((2, B, n_pad), out_dtype),
        grid_spec=pltpu.PrefetchScalarGridSpec(
            num_scalar_prefetch=0,
            # tile axis outer/"parallel", head axis inner/"arbitrary":
            # mean/var (exp) tiles interleave so both v7x TCs share EUP work.
            grid=(n_tiles, 2),
            in_specs=[
                pl.BlockSpec((B, n_hidden), lambda j, hd: (0, 0)),          # h (resident)
                pl.BlockSpec((None, n_hidden, tn), lambda j, hd: (hd, 0, j),
                             **wmv_spec_kwargs),                            # head weights (streamed)
                pl.BlockSpec((None, 1, tn), lambda j, hd: (hd, 0, j)),      # head bias (streamed)
            ],
            out_specs=pl.BlockSpec((None, B, tn), lambda j, hd: (hd, 0, j)),
        ),
        compiler_params=pltpu.CompilerParams(
            dimension_semantics=("parallel", "arbitrary"),
            vmem_limit_bytes=vmem_limit,
        ),
    )(h, wmv, bmv)

    p_m, p_v = out[0], out[1]
    if trim_output and n_pad != n_output:
        p_m = p_m[:, :n_output]
        p_v = p_v[:, :n_output]
    return p_m, p_v


if __name__ == "__main__":
    # Small shapes consistent with the module: latent -> hidden -> output.
    B, n_input, n_hidden, n_output = 8, 16, 128, 32

    key = jax.random.PRNGKey(0)
    keys = jax.random.split(key, 8)

    z = jax.random.normal(keys[0], (B, n_input), dtype=jnp.float32)

    w1 = jax.random.normal(keys[1], (n_input, n_hidden), dtype=jnp.float32) * 0.1
    b1 = jax.random.normal(keys[2], (1, n_hidden), dtype=jnp.float32) * 0.1  # dead under BN
    gamma = jnp.ones((1, n_hidden), dtype=jnp.float32)    # BatchNorm weight init
    beta = jnp.zeros((1, n_hidden), dtype=jnp.float32)    # BatchNorm bias init

    wm = jax.random.normal(keys[3], (n_hidden, n_output), dtype=jnp.float32) * 0.1
    bm = jax.random.normal(keys[4], (1, n_output), dtype=jnp.float32) * 0.1
    wv = jax.random.normal(keys[5], (n_hidden, n_output), dtype=jnp.float32) * 0.1
    bv = jax.random.normal(keys[6], (1, n_output), dtype=jnp.float32) * 0.1

    # Pack once at "weight-load time", then run the forward (jitted; the packed
    # params are closed over as constants so no per-call packing traffic).
    params = pack_gaussian_decoder_params(wm=wm, bm=bm, wv=wv, bv=bv,
                                          w1=w1, gamma=gamma, beta=beta)
    fwd = jax.jit(lambda zz: gaussian_decoder(zz, params))
    p_m, p_v = fwd(z)
    jax.block_until_ready((p_m, p_v))

    # Pure-f32 JAX reference (includes b1; BN cancels it, so the b1-free kernel
    # is mathematically identical).
    h_ref = z @ w1 + b1
    mu = jnp.mean(h_ref, axis=0, keepdims=True)
    va = jnp.mean((h_ref - mu) ** 2, axis=0, keepdims=True)
    h_ref = jnp.maximum((h_ref - mu) / jnp.sqrt(va + 0.001) * gamma + beta, 0.0)
    pm_ref = h_ref @ wm + bm
    pv_ref = jnp.exp(h_ref @ wv + bv) + 0.0001

    assert p_m.shape == (B, n_output) and p_v.shape == (B, n_output)
    # bf16 head-matmul operands (f32 accumulation) -> loosened tolerance.
    assert jnp.allclose(p_m, pm_ref, atol=5e-2, rtol=5e-2)
    assert jnp.allclose(p_v, pv_ref, atol=5e-2, rtol=5e-2)
    assert bool(jnp.all(p_v > 0))

    print("KERNEL_OK")
</pallas_src>

<mosaic_0001>
module attributes {stable_mosaic.version = 11 : i64} {
  func.func @_hidden_bn_relu_kernel(%arg0: i32, %arg1: memref<8x16xf32, #tpu.memory_space<vmem>>, %arg2: memref<16x128xf32, #tpu.memory_space<vmem>>, %arg3: memref<1x128xf32, #tpu.memory_space<vmem>>, %arg4: memref<1x128xf32, #tpu.memory_space<vmem>>, %arg5: memref<8x128xbf16, #tpu.memory_space<vmem>>) attributes {dimension_semantics = [#tpu.dimension_semantics<arbitrary>], iteration_bounds = array<i64: 1>, scalar_prefetch = 0 : i64, scratch_operands = 0 : i64, tpu.core_type = #tpu.core_type<tc>, window_params = [{pipeline_mode = #tpu.pipeline_mode<synchronous>, transform_indices = @transform_0, window_bounds = array<i64: 8, 16>}, {pipeline_mode = #tpu.pipeline_mode<synchronous>, transform_indices = @transform_1, window_bounds = array<i64: 16, 128>}, {pipeline_mode = #tpu.pipeline_mode<synchronous>, transform_indices = @transform_2, window_bounds = array<i64: 1, 128>}, {pipeline_mode = #tpu.pipeline_mode<synchronous>, transform_indices = @transform_3, window_bounds = array<i64: 1, 128>}, {pipeline_mode = #tpu.pipeline_mode<synchronous>, transform_indices = @transform_4, window_bounds = array<i64: 8, 128>}]} {
    %c0 = arith.constant 0 : index
    %c0_0 = arith.constant 0 : index
    %0 = vector.load %arg1[%c0, %c0_0] : memref<8x16xf32, #tpu.memory_space<vmem>>, vector<8x16xf32>
    %c0_1 = arith.constant 0 : index
    %c0_2 = arith.constant 0 : index
    %1 = vector.load %arg2[%c0_1, %c0_2] : memref<16x128xf32, #tpu.memory_space<vmem>>, vector<16x128xf32>
    %cst = arith.constant dense<0.000000e+00> : vector<8x128xf32>
    %2 = tpu.matmul %0, %1, %cst {dimension_numbers = #tpu.dot_dimension_numbers<[1], [0], [0], [1], [0, 0, 1, 1], [], []>} : vector<8x16xf32>, vector<16x128xf32>, vector<8x128xf32> -> vector<8x128xf32>
    %cst_3 = arith.constant dense<0.000000e+00> : vector<128xf32>
    %3 = vector.multi_reduction <add>, %2, %cst_3 [0] : vector<8x128xf32> to vector<128xf32>
    %4 = vector.shape_cast %3 : vector<128xf32> to vector<1x128xf32>
    %cst_4 = arith.constant 1.250000e-01 : f32
    %5 = vector.broadcast %cst_4 : f32 to vector<1x128xf32>
    %6 = arith.mulf %4, %5 : vector<1x128xf32>
    %7 = vector.broadcast %6 : vector<1x128xf32> to vector<8x128xf32>
    %8 = arith.subf %2, %7 : vector<8x128xf32>
    %9 = arith.mulf %8, %8 : vector<8x128xf32>
    %cst_5 = arith.constant dense<0.000000e+00> : vector<128xf32>
    %10 = vector.multi_reduction <add>, %9, %cst_5 [0] : vector<8x128xf32> to vector<128xf32>
    %11 = vector.shape_cast %10 : vector<128xf32> to vector<1x128xf32>
    %cst_6 = arith.constant 1.250000e-01 : f32
    %12 = vector.broadcast %cst_6 : f32 to vector<1x128xf32>
    %13 = arith.mulf %11, %12 : vector<1x128xf32>
    %c0_7 = arith.constant 0 : index
    %c0_8 = arith.constant 0 : index
    %14 = vector.load %arg3[%c0_7, %c0_8] : memref<1x128xf32, #tpu.memory_space<vmem>>, vector<1x128xf32>
    %cst_9 = arith.constant 1.000000e-03 : f32
    %15 = vector.broadcast %cst_9 : f32 to vector<1x128xf32>
    %16 = arith.addf %13, %15 : vector<1x128xf32>
    %17 = math.rsqrt %16 : vector<1x128xf32>
    %18 = arith.mulf %14, %17 : vector<1x128xf32>
    %19 = vector.broadcast %18 : vector<1x128xf32> to vector<8x128xf32>
    %20 = arith.mulf %8, %19 : vector<8x128xf32>
    %c0_10 = arith.constant 0 : index
    %c0_11 = arith.constant 0 : index
    %21 = vector.load %arg4[%c0_10, %c0_11] : memref<1x128xf32, #tpu.memory_space<vmem>>, vector<1x128xf32>
    %22 = vector.broadcast %21 : vector<1x128xf32> to vector<8x128xf32>
    %23 = arith.addf %20, %22 : vector<8x128xf32>
    %cst_12 = arith.constant 0.000000e+00 : f32
    %24 = vector.broadcast %cst_12 : f32 to vector<8x128xf32>
    %25 = arith.maximumf %23, %24 : vector<8x128xf32>
    %26 = arith.truncf %25 : vector<8x128xf32> to vector<8x128xbf16>
    %c0_13 = arith.constant 0 : index
    %c0_14 = arith.constant 0 : index
    %27 = vector.load %arg5[%c0_13, %c0_14] : memref<8x128xbf16, #tpu.memory_space<vmem>>, vector<8x128xbf16>
    tpu.vector_store %arg5[%c0_13, %c0_14], %26 {strides = array<i32>} : memref<8x128xbf16, #tpu.memory_space<vmem>>, vector<8x128xbf16>,
    return
  }
  func.func @transform_0(%arg0: i32) -> (i32, i32) {
    %c0_i32 = arith.constant 0 : i32
    %c0_i32_0 = arith.constant 0 : i32
    %c0_i32_1 = arith.constant 0 : i32
    return %c0_i32, %c0_i32_0 : i32, i32
  }
  func.func @transform_1(%arg0: i32) -> (i32, i32) {
    %c0_i32 = arith.constant 0 : i32
    %c0_i32_0 = arith.constant 0 : i32
    %c0_i32_1 = arith.constant 0 : i32
    return %c0_i32, %c0_i32_0 : i32, i32
  }
  func.func @transform_2(%arg0: i32) -> (i32, i32) {
    %c0_i32 = arith.constant 0 : i32
    %c0_i32_0 = arith.constant 0 : i32
    %c0_i32_1 = arith.constant 0 : i32
    return %c0_i32, %c0_i32_0 : i32, i32
  }
  func.func @transform_3(%arg0: i32) -> (i32, i32) {
    %c0_i32 = arith.constant 0 : i32
    %c0_i32_0 = arith.constant 0 : i32
    %c0_i32_1 = arith.constant 0 : i32
    return %c0_i32, %c0_i32_0 : i32, i32
  }
  func.func @transform_4(%arg0: i32) -> (i32, i32) {
    %c0_i32 = arith.constant 0 : i32
    %c0_i32_0 = arith.constant 0 : i32
    %c0_i32_1 = arith.constant 0 : i32
    return %c0_i32, %c0_i32_0 : i32, i32
  }
}

module attributes {stable_mosaic.version = 11 : i64} {
  func.func @_head_kernel(%arg0: i32, %arg1: i32, %arg2: memref<8x128xbf16, #tpu.memory_space<vmem>>, %arg3: memref<1x128x128xbf16, #tpu.memory_space<vmem>>, %arg4: memref<1x1x128xf32, #tpu.memory_space<vmem>>, %arg5: memref<1x8x128xf32, #tpu.memory_space<vmem>>) attributes {dimension_semantics = [#tpu.dimension_semantics<parallel>, #tpu.dimension_semantics<arbitrary>], iteration_bounds = array<i64: 1, 2>, scalar_prefetch = 0 : i64, scratch_operands = 0 : i64, tpu.core_type = #tpu.core_type<tc>, window_params = [{pipeline_mode = #tpu.pipeline_mode<synchronous>, transform_indices = @transform_0, window_bounds = array<i64: 8, 128>}, {transform_indices = @transform_1, window_bounds = array<i64: 1, 128, 128>}, {transform_indices = @transform_2, window_bounds = array<i64: 1, 1, 128>}, {transform_indices = @transform_3, window_bounds = array<i64: 1, 8, 128>}]} {
    %c0 = arith.constant 0 : index
    %c0_0 = arith.constant 0 : index
    %0 = vector.load %arg2[%c0, %c0_0] : memref<8x128xbf16, #tpu.memory_space<vmem>>, vector<8x128xbf16>
    %c0_1 = arith.constant 0 : index
    %c0_2 = arith.constant 0 : index
    %c0_3 = arith.constant 0 : index
    %1 = vector.load %arg3[%c0_1, %c0_2, %c0_3] : memref<1x128x128xbf16, #tpu.memory_space<vmem>>, vector<1x128x128xbf16>
    %2 = vector.shape_cast %1 : vector<1x128x128xbf16> to vector<128x128xbf16>
    %cst = arith.constant dense<0.000000e+00> : vector<8x128xf32>
    %3 = tpu.matmul %0, %2, %cst {dimension_numbers = #tpu.dot_dimension_numbers<[1], [0], [0], [1], [0, 0, 1, 1], [], []>} : vector<8x128xbf16>, vector<128x128xbf16>, vector<8x128xf32> -> vector<8x128xf32>
    %c0_4 = arith.constant 0 : index
    %c0_5 = arith.constant 0 : index
    %c0_6 = arith.constant 0 : index
    %4 = vector.load %arg4[%c0_4, %c0_5, %c0_6] : memref<1x1x128xf32, #tpu.memory_space<vmem>>, vector<1x1x128xf32>
    %5 = vector.shape_cast %4 : vector<1x1x128xf32> to vector<1x128xf32>
    %6 = vector.broadcast %5 : vector<1x128xf32> to vector<8x128xf32>
    %7 = arith.addf %3, %6 : vector<8x128xf32>
    %c0_i32 = arith.constant 0 : i32
    %8 = arith.cmpi eq, %arg1, %c0_i32 : i32
    %9 = arith.extui %8 : i1 to i32
    %c0_i32_7 = arith.constant 0 : i32
    %10 = arith.cmpi ne, %9, %c0_i32_7 : i32
    scf.if %10 {
      %c0_9 = arith.constant 0 : index
      %c0_10 = arith.constant 0 : index
      %c0_11 = arith.constant 0 : index
      %14 = vector.load %arg5[%c0_9, %c0_10, %c0_11] : memref<1x8x128xf32, #tpu.memory_space<vmem>>, vector<1x8x128xf32>
      %15 = vector.shape_cast %14 : vector<1x8x128xf32> to vector<8x128xf32>
      %16 = vector.shape_cast %7 : vector<8x128xf32> to vector<1x8x128xf32>
      tpu.vector_store %arg5[%c0_9, %c0_10, %c0_11], %16 {strides = array<i32>} : memref<1x8x128xf32, #tpu.memory_space<vmem>>, vector<1x8x128xf32>,
    } else {
    }
    %c1_i32 = arith.constant 1 : i32
    %11 = arith.cmpi eq, %arg1, %c1_i32 : i32
    %12 = arith.extui %11 : i1 to i32
    %c0_i32_8 = arith.constant 0 : i32
    %13 = arith.cmpi ne, %12, %c0_i32_8 : i32
    scf.if %13 {
      %14 = math.exp %7 : vector<8x128xf32>
      %cst_9 = arith.constant 9.99999974E-5 : f32
      %15 = vector.broadcast %cst_9 : f32 to vector<8x128xf32>
      %16 = arith.addf %14, %15 : vector<8x128xf32>
      %c0_10 = arith.constant 0 : index
      %c0_11 = arith.constant 0 : index
      %c0_12 = arith.constant 0 : index
      %17 = vector.load %arg5[%c0_10, %c0_11, %c0_12] : memref<1x8x128xf32, #tpu.memory_space<vmem>>, vector<1x8x128xf32>
      %18 = vector.shape_cast %17 : vector<1x8x128xf32> to vector<8x128xf32>
      %19 = vector.shape_cast %16 : vector<8x128xf32> to vector<1x8x128xf32>
      tpu.vector_store %arg5[%c0_10, %c0_11, %c0_12], %19 {strides = array<i32>} : memref<1x8x128xf32, #tpu.memory_space<vmem>>, vector<1x8x128xf32>,
    } else {
    }
    return
  }
  func.func @transform_0(%arg0: i32, %arg1: i32) -> (i32, i32) {
    %c0_i32 = arith.constant 0 : i32
    %c0_i32_0 = arith.constant 0 : i32
    %c0_i32_1 = arith.constant 0 : i32
    return %c0_i32, %c0_i32_0 : i32, i32
  }
  func.func @transform_1(%arg0: i32, %arg1: i32) -> (i32, i32, i32) {
    %c0_i32 = arith.constant 0 : i32
    %c0_i32_0 = arith.constant 0 : i32
    return %arg1, %c0_i32, %arg0 : i32, i32, i32
  }
  func.func @transform_2(%arg0: i32, %arg1: i32) -> (i32, i32, i32) {
    %c0_i32 = arith.constant 0 : i32
    %c0_i32_0 = arith.constant 0 : i32
    return %arg1, %c0_i32, %arg0 : i32, i32, i32
  }
  func.func @transform_3(%arg0: i32, %arg1: i32) -> (i32, i32, i32) {
    %c0_i32 = arith.constant 0 : i32
    %c0_i32_0 = arith.constant 0 : i32
    return %arg1, %c0_i32, %arg0 : i32, i32, i32
  }
}

</mosaic_0001>

<bundles_post_ra>
// kernel: _lambda_.2
= control target key start
LH: loop header
LB: loop body
LE: loop exit
PB: predicated region body
PF: predicated region fallthrough
CT: control target
= control target key end

     0   :  { %9 = vsyncpa [#allocation3], 0  ;;  %s274_s0 = inlined_call_operand.hbm [shape: f32[8,16], index: 0, kind: input, shape index: {}]   ;;  %s275_s1 = inlined_call_operand.hbm [shape: f32[16,128], index: 1, kind: input, shape index: {}]   ;;  %s276_s2 = inlined_call_operand.vmem [shape: f32[1,128], index: 2, kind: input, shape index: {}]   ;;  %s277_s3 = inlined_call_operand.vmem [shape: f32[1,128], index: 3, kind: input, shape index: {}]   ;;  %s278_s4 = inlined_call_operand.vmem [shape: bf16[8,128], index: 4, kind: output, shape index: {}]  }
   0x1   :  { %10 = vsyncpa [#allocation5], 0  ;;  %s228_s15 = smov [#allocation2]   ;;  %s229_s17 = smov [#allocation4]  }
   0x2   :  { %s17_s16 = sshll.u32 %s228_s15, 4  ;;  %s26_s18 = sshll.u32 %s229_s17, 4  ;;  %s18_s16 = int_to_ptr.vmem [resolvable:$true] %s17_s16  ;;  %s27_s18 = int_to_ptr.vmem [resolvable:$true] %s26_s18 }
   0x3   :  { %s192_s19 = scalar_lea.vmem %s18_s16, 128  ;;  %p197_p1 = scmp.lt.s32.totalorder %s18_s16, %s18_s16 }
   0x4   :  { %p193_p0 = scmp.ne.s32.totalorder %s18_s16, %s192_s19  ;;  %p198_p2 = scmp.lt.s32.totalorder %s192_s19, %s192_s19 }
   0x6   :  { %p199_p3 = por %p198_p2, %p197_p1 }
   0x8   :  { %p200_p4 = pnand %p199_p3, %p193_p0 }
   0xa   :  { %203 = shalt.err (!%p200_p4)
}
   0xb   :  { %20 = dma.hbm_to_vmem [thread:$0]  %s274_s0, 128, %s18_s16, [#allocation3]  }
   0xc   :  { %s212_s22 = scalar_lea.vmem %s27_s18, 256  ;;  %p217_p6 = scmp.lt.s32.totalorder %s27_s18, %s27_s18 }
   0xd   :  { %p213_p5 = scmp.ne.s32.totalorder %s27_s18, %s212_s22  ;;  %p218_p7 = scmp.lt.s32.totalorder %s212_s22, %s212_s22 }
   0xf   :  { %p219_p8 = por %p218_p7, %p217_p6 }
  0x11   :  { %p220_p9 = pnand %p219_p8, %p213_p5 }
  0x13   :  { %223 = shalt.err (!%p220_p9)
}
  0x14   :  { %s230_s23 = smov 128   ;;  %s231_s24 = smov 8  }
  0x15   :  { %32 = dma.hbm_to_vmem [thread:$0]  %s275_s1, 256, %s27_s18, [#allocation5], %s230_s23, %s230_s23, %s231_s24  }
  0x16   :  { %224 = dma.done.wait [#allocation3], 128  }
  0x17   :  { %225 = vsyncadd [#allocation3], 4294967168 }
  0x18   :  { %226 = dma.done.wait [#allocation5], 256  }
  0x19   :  { %227 = vsyncadd [#allocation5], 4294967040  ;;  %v232_v0 = vmov 0.0   ;;  %vm233_vm0 = vmmov 0   ;;  %v45_v1 = vld [vmem:[#allocation4 + $0x8] sm:$0xff]  ;;  %v44_v2 = vld [vmem:[#allocation4] sm:$0xff]  ;;  %v141_v23 = vlaneseq }
  0x1a   :  { %169 = vmatprep.subr.mxu0 %v232_v0  ;;  %173 = vmatprep.mubr.msk.f32.mxu0 %vm233_vm0, %v232_v0  ;;  %v43_v3 = vld [vmem:[#allocation2] sm:$0xff]  ;;  %vm46_vm1 = vcmask 130048  }
  0x1b   :  { %170 = vmatpush3.msra.mxu0 %v45_v1  ;;  %v142_v24 = vshrl.u32 %v141_v23, 7  ;;  %v136_v25 = vld [vmem:[%s276_s2] sm:$0x1] }
  0x1c   :  { %171 = vmatprep.subr.mxu0 %v232_v0  ;;  %v165_v30 = vld [vmem:[%s277_s3] ss:$0 sm:$0xff] }
  0x1d   :  { %172 = vmatpush3.msra.mxu0 %v44_v2  ;;  %v143_v26 = vsub.s32 0, %v142_v24 }
  0x1e   :  { %174 = vmatmul.mubr.msk.f32.vlgmr.msra.gmra.mxu0 %vm46_vm1, %v43_v3 }
  0xde   :  { %v116_v4 = vpop.f32.mrf.mxu0 }
  0xdf   :  { %v120_v5 = vrot.slane %v116_v4, 4 }
  0xe0   :  { %v175_v6 = vpop.f32.mrf.mxu0 }
  0xe1   :  { %v121_v7 = vadd.f32 %v120_v5, %v116_v4 }
  0xe3   :  { %v122_v8 = vrot.slane %v121_v7, 2 }
  0xe5   :  { %v123_v9 = vadd.f32 %v122_v8, %v121_v7 }
  0xe7   :  { %v124_v10 = vrot.slane %v123_v9, 1 }
  0xe9   :  { %v125_v11 = vadd.f32 %v124_v10, %v123_v9 }
  0xeb   :  { %v126_v12 = vmul.f32 0.125, %v125_v11 }
  0xed   :  { %v127_v13 = vsub.f32 %v116_v4, %v126_v12 }
  0xef   :  { %v128_v14 = vmul.f32 %v127_v13, %v127_v13 }
  0xf1   :  { %v129_v15 = vrot.slane %v128_v14, 4 }
  0xf3   :  { %v130_v16 = vadd.f32 %v129_v15, %v128_v14 }
  0xf5   :  { %v131_v17 = vrot.slane %v130_v16, 2 }
  0xf7   :  { %v132_v18 = vadd.f32 %v131_v17, %v130_v16 }
  0xf9   :  { %v133_v19 = vrot.slane %v132_v18, 1 }
  0xfb   :  { %v134_v20 = vadd.f32 %v133_v19, %v132_v18 }
  0xfd   :  { %v135_v21 = vmul.f32 0.125, %v134_v20 }
  0xff   :  { %v137_v22 = vadd.f32 0.001, %v135_v21 }
 0x101   :  { %182 = vrsqrt.f32 %v137_v22 }
 0x10e   :  { %v183_v27 = vpop.eup %182 }
 0x10f   :  { %v139_v28 = vmul.f32 %v183_v27, %v136_v25 }
 0x111   :  { %v144_v29 = vrot.slane %v139_v28, %v143_v26 }
 0x113   :  { %v146_v31 = vmul.f32 %v144_v29, %v127_v13 }
 0x115   :  { %v154_v32 = vadd.f32 %v165_v30, %v146_v31 }
 0x117   :  { %v155_v33 = vmax.f32 %v154_v32, 0.0 }
 0x119   :  { %v156_v34 = vpack.c.bf16 %v155_v33, %v155_v33 }
 0x11b   :  { %157 = vst [vmem:[%s278_s4] sm:$0xf] %v156_v34 }
 0x11c   :  { %162 = vsyncpa [#allocation3], 1 }
 0x11d   :  { %163 = vsyncpa [#allocation5], 1 }

// kernel: _lambda_.3
= control target key start
LH: loop header
LB: loop body
LE: loop exit
PB: predicated region body
PF: predicated region fallthrough
CT: control target
= control target key end

     0   :  { %8 = vsyncpa [#allocation3], 0  ;;  %s809_s0 = inlined_call_operand.vmem [shape: bf16[8,128], index: 0, kind: input, shape index: {}]   ;;  %s810_s1 = inlined_call_operand.hbm [shape: bf16[2,128,128], index: 1, kind: input, shape index: {}]   ;;  %s811_s2 = inlined_call_operand.vmem [shape: f32[2,1,128], index: 2, kind: input, shape index: {}]   ;;  %s812_s3 = inlined_call_operand.vmem [shape: f32[2,8,128], index: 3, kind: output, shape index: {}]  }
   0x1   :  { %10 = vsyncpa [#allocation3 + $0x1], 0  ;;  %s687_s12 = smov 0   ;;  %s689_s13 = smov 0  }
   0x2   :  { %s691_s14 = smov 0   ;;  %s693_s15 = smov 0  }
   0x3   :  { %s695_s16 = smov 0   ;;  %s697_s17 = smov 0  }
   0x4 LB: > { %s460_s18 = sadd.s32 4294967295, %s660_s17   ;;  %s25_s19 = sadd.s32 1, %s656_s16  ;;  %s660_s17 = sphi %s697_s17, %s16_s17   ;;  %s656_s16 = sphi %s695_s16, %s820_s16   ;;  %s652_s15 = sphi %s693_s15, %s819_s15   ;;  %s648_s14 = sphi %s691_s14, %s818_s14   ;;  %s644_s13 = sphi %s689_s13, %s817_s13   ;;  %s640_s12 = sphi %s687_s12, %s816_s12  }
   0x5   : > { %p26_p0 = scmp.ge.s32.totalorder %s25_s19, 2  ;;  %s58_s20 = sadd.s32 1, %s648_s14 }
   0x6   : > { %p65_p1 = scmp.ne.s32.totalorder %s648_s14, %s644_s13  ;;  %p66_p2 = scmp.eq.s32.totalorder %s660_s17, 0 }
   0x7   : > { %s822_s19 = smov (%p26_p0, %s25_s19), 0  ;;  %p71_p4 = scmp.ne.s32.totalorder %s644_s13, %s640_s12 }
   0x8   : > { %p723_p3 = por %p66_p2, %p65_p1  ;;  %s53_s22 = ssub.s32 %s656_s16, %s822_s19 }
   0x9   : > { %p72_p5 = scmp.eq.s32.totalorder %s460_s18, 0  ;;  %p56_p6 = scmp.eq.s32.totalorder %s53_s22, 0 }
   0xa   : > { %p519_p8 = scmp.lt.s32.totalorder %s660_s17, 2  ;;  %s154_s25 = sand.u32 1, %s648_s14  }
   0xb   : > { %p730_p7 = por %p72_p5, %p71_p4  ;;  %s483_s26 = sshll.u32 %s656_s16, 10 }
   0xc   : > { %s736_s24 = scalar_select %p56_p6, %s648_s14, %s58_s20  }
   0xd   : > { %s464_s27 = sshll.u32 %s154_s25, 6  ;;  %s165_s30 = scalar_lea.hbm %s810_s1, %s483_s26 }
   0xe   : > { %s158_s4 = scalar_lea.vmem [#allocation2], %s464_s27  ;;  %p745_p9 = pnand %p519_p8, %p723_p3 }
   0xf   : > { %s166_s5 = sshll.u32 %s158_s4, 4  ;;  %s155_s7 = scalar_lea.sflag [#allocation3], %s154_s25  ;;  %s167_s5 = int_to_ptr.vmem [resolvable:$true] %s166_s5 }
  0x10   : > { %p584_p10 = pneg %p745_p9  ;;  %s595_s8 = scalar_lea.vmem %s167_s5, 1024 }
  0x11   : > { %p596_p11 = scmp.ne.s32.totalorder %s167_s5, %s595_s8  ;;  %s662_s9 = smov [#allocation2]  }
  0x12   : > { %s600_s10 = sshll.u32 %s662_s9, 4  ;;  %s601_s10 = int_to_ptr.vmem [resolvable:$false] %s600_s10 }
  0x13   : > { %p598_p12 = pnand %p596_p11, %p584_p10  ;;  %s602_s11 = scalar_lea.vmem %s601_s10, 2048 }
  0x14   : > { %p603_p0 = scmp.lt.s32.totalorder %s167_s5, %s601_s10  ;;  %p604_p1 = scmp.lt.s32.totalorder %s602_s11, %s595_s8 }
  0x15   : > { %p599_p13 = pneg %p598_p12 }
  0x16   : > { %p605_p2 = por %p604_p1, %p603_p0 }
  0x18   : > { %p606_p3 = pnand %p605_p2, %p599_p13 }
  0x1a   : > { %609 = shalt.err (!%p606_p3)
}
  0x1b   : > { %s663_s12 = smov 64   ;;  %s664_s18 = smov 4  }
  0x1c   : > { %518 = dma.hbm_to_vmem [thread:$0]  (!%p745_p9), %s165_s30, 1024, %s167_s5, %s155_s7, %s663_s12, %s663_s12, %s664_s18  }
  0x1d   : > { %p467_p4 = scmp.ge.s32.totalorder %s660_s17, 1  ;;  %p183_p5 = scmp.lt.s32.totalorder %s660_s17, 3 }
  0x1f   : > { %p184_p6 = pnand %p467_p4, %p183_p5 }
  0x20   : > { %s189_s20 = sand.u32 (!%p184_p6), 1, %s644_s13  }
  0x21   : > { %187 = sbr.rel (%p184_p6) target bundleno = 298 (0x12a), region = 32  ;;  %s468_s21 = sshll.u32 (!%p184_p6), %s189_s20, 6 }
  0x22   : > { %s190_s22 = scalar_lea.sflag (!%p184_p6), [#allocation3], %s189_s20  ;;  %s756_s25 = scalar_lea.vmem (!%p184_p6), [#allocation2], %s468_s21 }
  0x26   : > { %635 = dma.done.wait (%p730_p7), %s190_s22, 1024  }
  0x27   : > { %637 = vsyncadd (%p730_p7), %s190_s22, 4294966272  ;;  %p224_p8 = scmp.lt.s32.totalorder %s652_s15, 1  ;;  %v665_v0 = vmov 0.0   ;;  %vm666_vm0 = vmmov 0   ;;  %v572_v1 = vld [vmem:[%s756_s25 + $0x38] sm:$0xff]   ;;  %v573_v2 = vld [vmem:[%s756_s25 + $0x30] sm:$0xff]  }
  0x28   : > { %493 = vmatprep.subr.bf16.mxu0 %v665_v0  ;;  %509 = vmatprep.mubr.msk.bf16.mxu0 %vm666_vm0, %v665_v0  ;;  %v574_v3 = vld [vmem:[%s756_s25 + $0x28] sm:$0xff]   ;;  %v575_v4 = vld [vmem:[%s756_s25 + $0x20] sm:$0xff]   ;;  %v576_v5 = vld [vmem:[%s756_s25 + $0x18] sm:$0xff]   ;;  %p479_p7 = scmp.ne.s32.totalorder %s652_s15, 0 }
  0x29   : > { %s764_s26 = scalar_select %p224_p8, %s652_s15, 1  ;;  %494 = vmatpush3.bf16.msra.mxu0 %v572_v1  ;;  %v577_v6 = vld [vmem:[%s756_s25 + $0x10] sm:$0xff]   ;;  %v578_v7 = vld [vmem:[%s756_s25 + $0x8] sm:$0xff]   ;;  %v579_v8 = vld [vmem:[%s756_s25] sm:$0xff]  }
  0x2a   : > { %495 = vmatprep.subr.bf16.mxu0 %v665_v0  ;;  %v238_v9 = vld [vmem:[%s809_s0] sm:$0xf] }
  0x2b   : > { %s469_s27 = sshll.u32 %s764_s26, 3  ;;  %s229_s7 = scalar_lea.vmem %s811_s2, %s764_s26 }
  0x2c   : > { %s770_s23 = scalar_lea.vmem %s812_s3, %s469_s27  ;;  %v470_v10 = vld [vmem:[%s229_s7] ss:$0 sm:$0xff] }
  0x2d   : > { %496 = vmatpush3.bf16.msra.mxu0 %v573_v2 }
  0x2e   : > { %497 = vmatprep.subr.bf16.mxu0 %v665_v0 }
  0x31   : > { %498 = vmatpush3.bf16.msra.mxu0 %v574_v3 }
  0x32   : > { %499 = vmatprep.subr.bf16.mxu0 %v665_v0 }
  0x35   : > { %500 = vmatpush3.bf16.msra.mxu0 %v575_v4 }
  0x36   : > { %501 = vmatprep.subr.bf16.mxu0 %v665_v0 }
  0x39   : > { %502 = vmatpush3.bf16.msra.mxu0 %v576_v5 }
  0x3a   : > { %503 = vmatprep.subr.bf16.mxu0 %v665_v0 }
  0x3d   : > { %504 = vmatpush3.bf16.msra.mxu0 %v577_v6 }
  0x3e   : > { %505 = vmatprep.subr.bf16.mxu0 %v665_v0 }
  0x41   : > { %506 = vmatpush3.bf16.msra.mxu0 %v578_v7 }
  0x42   : > { %507 = vmatprep.subr.bf16.mxu0 %v665_v0 }
  0x45   : > { %508 = vmatpush3.bf16.msra.mxu0 %v579_v8 }
  0x48   : > { %510 = vmatmul.mubr.bf16.vlgmr.msra.gmra.mxu0 %v238_v9 }
 0x108   : > { %v344_v11 = vpop.f32.mrf.mxu0 }
 0x109   : > { %v345_v12 = vadd.f32 %v470_v10, %v344_v11 }
 0x10a   : > { %v511_v13 = vpop.f32.mrf.mxu0  ;;  %353 = sbr.rel (%p479_p7) target bundleno = 272 (0x110), region = 40 }
 0x10c   : > { %v347_v14 = vpop.f32.mrf.mxu0 }
 0x10e   : > { %v512_v15 = vpop.f32.mrf.mxu0 }
 0x10f   : > { %354 = vst [vmem:[%s770_s23] sm:$0xff] %v345_v12 }
 0x110 PF: > { %p480_p9 = scmp.ne.s32.totalorder %s652_s15, 1 }
 0x112   : > { %358 = sbr.rel (%p480_p9) target bundleno = 298 (0x12a), region = 44 }
 0x117   : > { %v359_v16 = vmul.f32 1.442695, %v345_v12 }
 0x119   : > { %580 = vpow2.f32 %v359_v16 }
 0x126   : > { %v581_v17 = vpop.eup %580 }
 0x127   : > { %v361_v18 = vadd.f32 0.0001, %v581_v17 }
 0x129   : > { %362 = vst [vmem:[%s770_s23] sm:$0xff] %v361_v18 }
 0x12a PF: > { %s16_s17 = sadd.s32 1, %s660_s17   ;;  %s816_s12 = smov %s644_s13 }
 0x12b   : > { %p13_p10 = scmp.ge.s32.totalorder %s16_s17, 4   ;;  %s817_s13 = smov %s648_s14 }
 0x12c   : > { %s818_s14 = smov %s736_s24  ;;  %s819_s15 = smov %s656_s16 }
 0x12d   : > { %s820_s16 = smov %s822_s19  ;;  %15 = sbr.rel (!%p13_p10) target bundleno = 4 (0x4), region = 83 }
 0x132   :  { %388 = vsyncpa [#allocation3], 1 }
 0x133   :  { %390 = vsyncpa [#allocation3 + $0x1], 1 }

</bundles_post_ra>
